<compile_context>
chip_gen: v7x
topology: tpu7x:2x2x1
jax: 0.10.0
libtpu: 0.0.40
codegen_flags: <defaults>
</compile_context>

<pallas_src>
import functools

import jax
import jax.numpy as jnp
from jax.experimental import pallas as pl
from jax.experimental.pallas import tpu as pltpu


_LANE = 128
_SUBLANE = 8
_ROW_ALIGN = 32          # covers f32 (8), bf16 (16), int8/fp8 (32) sublane packing
_MAX_ROW_TILE = 4096


@functools.lru_cache(maxsize=None)
def _budget():
    """(per-block byte budget, vmem_limit_bytes or None) by TPU generation."""
    try:
        kind = jax.devices()[0].device_kind.lower()
    except Exception:  # pragma: no cover - defensive
        kind = ""
    if "v7" in kind:
        # 64 MiB physical VMEM / TC: 4 MiB blocks, raise scoped limit to 48 MiB.
        return 4 << 20, 48 << 20
    if "v6" in kind:
        # 128 MiB physical VMEM: 4 MiB blocks, 64 MiB scoped limit.
        return 4 << 20, 64 << 20
    # v5e (16 MiB scoped default) and unknown devices: conservative 2 MiB blocks.
    return 2 << 20, None


def _compiler_params():
    _, vmem_limit = _budget()
    return pltpu.CompilerParams(
        dimension_semantics=("parallel", "parallel"),
        vmem_limit_bytes=vmem_limit,
    )


def _add_kernel(x_ref, b_ref, o_ref):
    # Elementwise broadcast add; b_ref is (1, tc) (sublane broadcast) or
    # (bm, 1) (lane broadcast).  One VPU add per tile — purely HBM-bound.
    o_ref[...] = x_ref[...] + b_ref[...]


def _pick_lane_tile(L, itemsize, block_bytes):
    """Lane-axis tile: full row (one contiguous DMA) if an >=8-row block fits
    the budget; otherwise the largest multiple of 128 with small tail waste."""
    if L * itemsize * _SUBLANE <= block_bytes:
        return L
    cap = (block_bytes // (_SUBLANE * itemsize)) // _LANE * _LANE
    cap = max(_LANE, cap)
    best_t, best_frac = cap, None
    t = cap
    while t >= _LANE:
        padded = pl.cdiv(L, t) * t
        frac = (padded - L) / L
        if frac <= 0.05:
            return t            # largest tile with <=5% wasted store bandwidth
        if best_frac is None or frac < best_frac:
            best_frac, best_t = frac, t
        t -= _LANE
    return best_t


def _pick_row_tile(n_rows, lane_tile, itemsize, block_bytes,
                   extra_row_bytes=0, lane_blocks=1):
    """Row tile from the per-block budget; multiple of 32 when possible
    (multiple of 8 otherwise).  Splits a 1-block grid into >=2 blocks so both
    v7x TensorCores get work."""
    per_row = lane_tile * itemsize + extra_row_bytes
    bm = block_bytes // max(1, per_row)
    if bm >= _ROW_ALIGN:
        bm = (bm // _ROW_ALIGN) * _ROW_ALIGN
    else:
        bm = max(_SUBLANE, (bm // _SUBLANE) * _SUBLANE)
    bm = min(bm, _MAX_ROW_TILE)
    if bm >= n_rows:
        bm = n_rows
        if lane_blocks == 1 and n_rows >= 2 * _ROW_ALIGN:
            half = ((n_rows + 1) // 2 + _ROW_ALIGN - 1) // _ROW_ALIGN * _ROW_ALIGN
            if half < n_rows:
                bm = half
    return bm


def _add_bias_cols(x2d, bias_row):
    """x2d: (M, Ce), bias_row: (1, Ce). out = x2d + bias_row (sublane bcast)."""
    M, Ce = x2d.shape
    itemsize = jnp.dtype(x2d.dtype).itemsize
    block_bytes, _ = _budget()
    tc = _pick_lane_tile(Ce, itemsize, block_bytes)
    lane_blocks = pl.cdiv(Ce, tc)
    bm = _pick_row_tile(M, tc, itemsize, block_bytes, lane_blocks=lane_blocks)
    grid = (pl.cdiv(M, bm), lane_blocks)
    return pl.pallas_call(
        _add_kernel,
        out_shape=jax.ShapeDtypeStruct((M, Ce), x2d.dtype),
        grid_spec=pltpu.PrefetchScalarGridSpec(
            num_scalar_prefetch=0,
            grid=grid,
            in_specs=[
                pl.BlockSpec((bm, tc), lambda i, j: (i, j)),
                pl.BlockSpec((1, tc), lambda i, j: (0, j)),
            ],
            out_specs=pl.BlockSpec((bm, tc), lambda i, j: (i, j)),
        ),
        compiler_params=_compiler_params(),
    )(x2d, bias_row)


def _add_bias_rows(x_rows, bias_col):
    """x_rows: (R, L), bias_col: (R, 1). out = x_rows + bias_col (lane bcast)."""
    R, L = x_rows.shape
    itemsize = jnp.dtype(x_rows.dtype).itemsize
    block_bytes, _ = _budget()
    tl = _pick_lane_tile(L, itemsize, block_bytes)
    lane_blocks = pl.cdiv(L, tl)
    # The (bm, 1) bias block is lane-padded to (bm, 128) in VMEM; account for
    # those 128*itemsize bytes per row so the real footprint fits the budget.
    bm = _pick_row_tile(R, tl, itemsize, block_bytes,
                        extra_row_bytes=_LANE * itemsize,
                        lane_blocks=lane_blocks)
    grid = (pl.cdiv(R, bm), lane_blocks)
    return pl.pallas_call(
        _add_kernel,
        out_shape=jax.ShapeDtypeStruct((R, L), x_rows.dtype),
        grid_spec=pltpu.PrefetchScalarGridSpec(
            num_scalar_prefetch=0,
            grid=grid,
            in_specs=[
                pl.BlockSpec((bm, tl), lambda i, j: (i, j)),
                pl.BlockSpec((bm, 1), lambda i, j: (i, 0)),
            ],
            out_specs=pl.BlockSpec((bm, tl), lambda i, j: (i, j)),
        ),
        compiler_params=_compiler_params(),
    )(x_rows, bias_col)


def _pick_fold(M, C):
    """Rows folded into the lane axis for 2-D inputs: maximize output lane
    density (prefer k*C a multiple of 128, then as many lanes as possible up
    to ~2048), restricted to divisors of M so the reshape stays a free view."""
    if M <= 1 or C >= 512 or C % _LANE == 0:
        return 1
    k_hi = min(M, max(1, 2048 // C))
    best_k, best_score = 1, None
    for k in range(1, k_hi + 1):
        if M % k != 0:
            continue
        lanes = k * C
        score = (lanes % _LANE == 0, lanes)
        if best_score is None or score > best_score:
            best_score, best_k = score, k
    return best_k


def add_bias(x, bias_param):
    """Pallas equivalent of AddBias.forward.

    bias_param: shape (C, 1) — mirrors nn.Parameter(bias.unsqueeze(1)).
    x: (N, C) or (N, C, H, W) in NCHW (PyTorch convention; any ndim >= 3 is
    treated as (N, C, ...)).
    """
    C = bias_param.shape[0]
    bias_vec = bias_param.reshape(C).astype(x.dtype)

    if x.ndim == 2:
        M, Cx = x.shape
        assert Cx == C
        bias_row = bias_vec.reshape(1, C)
        # Lane-density fold: pack k rows per output row so stores are (near)
        # lane-dense instead of C-lane masked partial stores.
        k = _pick_fold(M, C)
        if k > 1:
            out = _add_bias_cols(x.reshape(M // k, k * C),
                                 jnp.tile(bias_row, (1, k)))
            return out.reshape(M, C)
        return _add_bias_cols(x, bias_row)

    # N-D NCHW path — no NCHW<->NHWC transposes, only free reshapes.
    N, Cx = x.shape[0], x.shape[1]
    assert Cx == C
    spatial = 1
    for d in x.shape[2:]:
        spatial *= d

    if spatial < _LANE and C * spatial <= 8192:
        # Small-spatial fast path: fold C into the lane axis so the output
        # last dim is lane-dense; bias row is tiny (C*spatial elements).
        x2 = x.reshape(N, C * spatial)
        bias_row = jnp.repeat(bias_vec, spatial).reshape(1, C * spatial)
        out = _add_bias_cols(x2, bias_row)
        return out.reshape(x.shape)

    # General path: native layout viewed as (N*C, H*W) with a per-row bias
    # column broadcast along the lane axis.
    x_rows = x.reshape(N * C, spatial)
    bias_col = jnp.tile(bias_vec.reshape(1, C), (N, 1)).reshape(N * C, 1)
    out = _add_bias_rows(x_rows, bias_col)
    return out.reshape(x.shape)


if __name__ == "__main__":
    key = jax.random.PRNGKey(0)
    k_bias, k_x4, k_x2 = jax.random.split(key, 3)

    C = 4
    # Deterministic "parameter": bias of shape (C,), stored as (C, 1) like
    # nn.Parameter(bias.unsqueeze(1)).
    bias = jax.random.normal(k_bias, (C,), dtype=jnp.float32)
    bias_param = bias[:, None]  # (C, 1)

    # 4-D NCHW input.
    x4 = jax.random.normal(k_x4, (2, C, 16, 16), dtype=jnp.float32)
    out4 = jax.block_until_ready(add_bias(x4, bias_param))
    ref4 = x4 + bias_param.reshape(1, C, 1, 1)

    # 2-D input.
    x2 = jax.random.normal(k_x2, (8, C), dtype=jnp.float32)
    out2 = jax.block_until_ready(add_bias(x2, bias_param))
    ref2 = x2 + bias_param.reshape(1, C)

    assert out4.shape == x4.shape and out4.dtype == x4.dtype
    assert out2.shape == x2.shape and out2.dtype == x2.dtype
    assert jnp.allclose(out4, ref4, atol=1e-6, rtol=1e-6)
    assert jnp.allclose(out2, ref2, atol=1e-6, rtol=1e-6)

    # Odd-shaped checks (fold fallback / non-multiple dims / small-spatial path).
    k_b2, k_x2b = jax.random.split(k_x2)
    C2 = 10
    bias2 = jax.random.normal(k_b2, (C2,), dtype=jnp.float32)[:, None]
    x2b = jax.random.normal(k_x2b, (6, C2), dtype=jnp.float32)
    out2b = jax.block_until_ready(add_bias(x2b, bias2))
    assert jnp.allclose(out2b, x2b + bias2.reshape(1, C2), atol=1e-6, rtol=1e-6)

    x4b = jax.random.normal(k_x2b, (3, C2, 7, 9), dtype=jnp.float32)
    out4b = jax.block_until_ready(add_bias(x4b, bias2))
    assert jnp.allclose(out4b, x4b + bias2.reshape(1, C2, 1, 1),
                        atol=1e-6, rtol=1e-6)

    # Larger 4-D shape exercising the general rows path with >1 row block.
    x4c = jax.random.normal(k_x4, (2, 64, 32, 32), dtype=jnp.float32)
    bias3 = jax.random.normal(k_b2, (64,), dtype=jnp.float32)[:, None]
    out4c = jax.block_until_ready(add_bias(x4c, bias3))
    assert jnp.allclose(out4c, x4c + bias3.reshape(1, 64, 1, 1),
                        atol=1e-6, rtol=1e-6)

    print("KERNEL_OK")
</pallas_src>

<mosaic_0001>
module attributes {stable_mosaic.version = 11 : i64} {
  func.func @_add_kernel(%arg0: i32, %arg1: i32, %arg2: memref<8x256xf32, #tpu.memory_space<vmem>>, %arg3: memref<8x1xf32, #tpu.memory_space<vmem>>, %arg4: memref<8x256xf32, #tpu.memory_space<vmem>>) attributes {dimension_semantics = [#tpu.dimension_semantics<parallel>, #tpu.dimension_semantics<parallel>], iteration_bounds = array<i64: 1, 1>, scalar_prefetch = 0 : i64, scratch_operands = 0 : i64, tpu.core_type = #tpu.core_type<tc>, window_params = [{transform_indices = @transform_0, window_bounds = array<i64: 8, 256>}, {transform_indices = @transform_1, window_bounds = array<i64: 8, 1>}, {transform_indices = @transform_2, window_bounds = array<i64: 8, 256>}]} {
    %c0 = arith.constant 0 : index
    %c0_0 = arith.constant 0 : index
    %0 = vector.load %arg2[%c0, %c0_0] : memref<8x256xf32, #tpu.memory_space<vmem>>, vector<8x256xf32>
    %c0_1 = arith.constant 0 : index
    %c0_2 = arith.constant 0 : index
    %1 = vector.load %arg3[%c0_1, %c0_2] : memref<8x1xf32, #tpu.memory_space<vmem>>, vector<8x1xf32>
    %2 = vector.broadcast %1 : vector<8x1xf32> to vector<8x256xf32>
    %3 = arith.addf %0, %2 : vector<8x256xf32>
    %c0_3 = arith.constant 0 : index
    %c0_4 = arith.constant 0 : index
    %4 = vector.load %arg4[%c0_3, %c0_4] : memref<8x256xf32, #tpu.memory_space<vmem>>, vector<8x256xf32>
    tpu.vector_store %arg4[%c0_3, %c0_4], %3 {strides = array<i32>} : memref<8x256xf32, #tpu.memory_space<vmem>>, vector<8x256xf32>,
    return
  }
  func.func @transform_0(%arg0: i32, %arg1: i32) -> (i32, i32) {
    %c0_i32 = arith.constant 0 : i32
    return %arg0, %arg1 : i32, i32
  }
  func.func @transform_1(%arg0: i32, %arg1: i32) -> (i32, i32) {
    %c0_i32 = arith.constant 0 : i32
    %c0_i32_0 = arith.constant 0 : i32
    return %arg0, %c0_i32 : i32, i32
  }
  func.func @transform_2(%arg0: i32, %arg1: i32) -> (i32, i32) {
    %c0_i32 = arith.constant 0 : i32
    return %arg0, %arg1 : i32, i32
  }
}

</mosaic_0001>

<bundles_post_ra>
// kernel: tpu_custom_call.1
= control target key start
LH: loop header
LB: loop body
LE: loop exit
PB: predicated region body
PF: predicated region fallthrough
CT: control target
= control target key end

     0   :  { %7 = vsyncpa [#allocation3], 0  ;;  %s148_s0 = inlined_call_operand.hbm [shape: f32[8,256], index: 0, kind: input, shape index: {}]   ;;  %s149_s1 = inlined_call_operand.vmem [shape: f32[8,1], index: 1, kind: input, shape index: {}]   ;;  %s150_s2 = inlined_call_operand.hbm [shape: f32[8,256], index: 2, kind: output, shape index: {}]  }
   0x1   :  { %8 = vsyncpa [#allocation4], 0  ;;  %s103_s9 = smov [#allocation2]   ;;  %s55_s13 = scalar_lea.hbm %s148_s0, 256 }
   0x2   :  { %s15_s10 = sshll.u32 %s103_s9, 4  ;;  %p56_p0 = scmp.ne.s32.totalorder %s148_s0, %s55_s13  ;;  %s16_s10 = int_to_ptr.vmem [resolvable:$true] %s15_s10 }
   0x3   :  { %p59_p1 = scmp.lt.u32.totalorder %s55_s13, %s148_s0 }
   0x5   :  { %p61_p2 = pnand %p59_p1, %p56_p0 }
   0x7   :  { %64 = shalt.err (!%p61_p2)
}
   0x8   :  { %s65_s18 = scalar_lea.vmem %s16_s10, 256  ;;  %p70_p4 = scmp.lt.s32.totalorder %s16_s10, %s16_s10 }
   0x9   :  { %p66_p3 = scmp.ne.s32.totalorder %s16_s10, %s65_s18  ;;  %p71_p5 = scmp.lt.s32.totalorder %s65_s18, %s65_s18 }
   0xb   :  { %p72_p6 = por %p71_p5, %p70_p4 }
   0xd   :  { %p73_p7 = pnand %p72_p6, %p66_p3 }
   0xf   :  { %76 = shalt.err (!%p73_p7)
}
  0x10   :  { %18 = dma.hbm_to_vmem [thread:$0]  %s148_s0, 256, %s16_s10, [#allocation3]  }
  0x11   :  { %99 = dma.done.wait [#allocation3], 256  }
  0x12   :  { %100 = vsyncadd [#allocation3], 4294967040  ;;  %v104_v0 = vmov 0   ;;  %v26_v1 = vld [vmem:[%s149_s1] sm:$0xff]  ;;  %v25_v3 = vld [vmem:[#allocation2 + $0x8] sm:$0xff]  ;;  %s105_s23 = smov [#allocation5]  }
  0x13   :  { %54 = vset.pattern.permute.xlu0 %v104_v0  ;;  %v24_v2 = vld [vmem:[#allocation2] sm:$0xff]  ;;  %s42_s24 = sshll.u32 %s105_s23, 4  ;;  %s43_s24 = int_to_ptr.vmem [resolvable:$true] %s42_s24 }
  0x14   :  { %29 = vperm.xlu0 %54, %v26_v1   ;;  %s77_s0 = scalar_lea.vmem %s43_s24, 256  ;;  %p82_p9 = scmp.lt.s32.totalorder %s43_s24, %s43_s24 }
  0x15   :  { %p78_p8 = scmp.ne.s32.totalorder %s43_s24, %s77_s0  ;;  %p83_p10 = scmp.lt.s32.totalorder %s77_s0, %s77_s0 }
  0x17   :  { %p84_p11 = por %p83_p10, %p82_p9 }
  0x19   :  { %p85_p12 = pnand %p84_p11, %p78_p8 }
  0x93   :  { %v30_v4 = vpop.permute.xlu0 %29 }
  0x94   :  { %v32_v5 = vadd.f32 %v30_v4, %v24_v2  ;;  %v33_v6 = vadd.f32 %v30_v4, %v25_v3 }
  0x96   :  { %34 = vst [vmem:[#allocation5] sm:$0xff] %v32_v5  ;;  %35 = vst [vmem:[#allocation5 + $0x8] sm:$0xff] %v33_v6 }
  0x97   :  { %88 = shalt.err (!%p85_p12)
}
  0x98   :  { %s89_s26 = scalar_lea.hbm %s150_s2, 256 }
  0x99   :  { %p90_p13 = scmp.ne.s32.totalorder %s150_s2, %s89_s26  ;;  %p93_p0 = scmp.lt.u32.totalorder %s89_s26, %s150_s2 }
  0x9b   :  { %p95_p1 = pnand %p93_p0, %p90_p13 }
  0x9d   :  { %98 = shalt.err (!%p95_p1)
}
  0x9e   :  { %45 = dma.vmem_to_hbm [thread:$0]  %s43_s24, 256, %s150_s2, [#allocation4]  }
  0x9f   :  { %101 = dma.done.wait [#allocation4], 256  }
  0xa0   :  { %102 = vsyncadd [#allocation4], 4294967040 }
  0xa1   :  { %49 = vsyncpa [#allocation3], 1 }
  0xa2   :  { %50 = vsyncpa [#allocation4], 1 }

</bundles_post_ra>
